<compile_context>
chip_gen: v7x
topology: tpu7x:2x2x1
jax: 0.10.0
libtpu: 0.0.40
codegen_flags: <defaults>
</compile_context>

<pallas_src>
import jax
import jax.numpy as jnp
from jax.experimental import pallas as pl
from jax.experimental.pallas import tpu as pltpu

_LANE = 128
_VMEM_LIMIT = 32 * 1024 * 1024          # safe scoped limit on v5e / v6e / v7x
_FUSED_VMEM_BUDGET = 20 * 1024 * 1024   # conservative gate for the fused path


# --------------------------------------------------------------------------
# Fused single-pass kernel: pooling + FC + sigmoid + apply in one grid step.
# --------------------------------------------------------------------------
def _make_fused_kernel(C, hw_true, hw_pad, need_mask):
    inv_hw = 1.0 / float(hw_true)

    def kernel(x_ref, w1_ref, w2_ref, o_ref):
        xf = x_ref[0].astype(jnp.float32)                      # (C, HW_pad)
        if need_mask:
            lane = jax.lax.broadcasted_iota(jnp.int32, (C, hw_pad), 1)
            valid = lane < hw_true
            s = jnp.sum(jnp.where(valid, xf, 0.0), axis=-1, keepdims=True)
            m = jnp.max(jnp.where(valid, xf, -jnp.inf), axis=-1, keepdims=True)
        else:
            s = jnp.sum(xf, axis=-1, keepdims=True)             # (C, 1)
            m = jnp.max(xf, axis=-1, keepdims=True)             # (C, 1)
        avg = s * inv_hw                                        # true-HW mean

        # Fuse avg/max into a single (C, 2) RHS (col 0 = avg, col 1 = max);
        # fc(avg) + fc(max) == sum over columns after the second matmul.
        col = jax.lax.broadcasted_iota(jnp.int32, (C, 2), 1)
        v = jnp.where(col == 0, avg, m)                         # (C, 2)
        w1 = w1_ref[...].astype(jnp.float32)                    # (C_r, C)
        w2 = w2_ref[...].astype(jnp.float32)                    # (C, C_r)
        h = jnp.maximum(
            jnp.dot(w1, v, preferred_element_type=jnp.float32), 0.0)   # (C_r, 2)
        y = jnp.dot(w2, h, preferred_element_type=jnp.float32)         # (C, 2)
        att = jax.nn.sigmoid(jnp.sum(y, axis=-1, keepdims=True))       # (C, 1)

        # Apply in the input's native dtype (no whole-block f32 store path).
        o_ref[0] = att.astype(o_ref.dtype) * x_ref[0]

    return kernel


# --------------------------------------------------------------------------
# Two-pass fallback (large spatial): pooling/FC pass + apply pass.
# --------------------------------------------------------------------------
def _make_pool_fc_kernel(C, hw_true, tile, need_mask):
    n_chunks = tile // _LANE
    inv_hw = 1.0 / float(hw_true)

    def kernel(x_ref, w1_ref, w2_ref, att_ref, sum_sc, max_sc):
        t = pl.program_id(1)

        @pl.when(t == 0)
        def _init():
            sum_sc[...] = jnp.zeros_like(sum_sc)
            max_sc[...] = jnp.full_like(max_sc, -jnp.inf)

        # Bulk of the reduction on the VPU: accumulate 128-lane chunks into
        # (C, 128) scratch; only one tiny XLU lane-reduce happens at the end.
        for c in range(n_chunks):
            xc = x_ref[0, :, pl.ds(c * _LANE, _LANE)].astype(jnp.float32)  # (C,128)
            if need_mask:
                base = t * tile + c * _LANE
                lane = jax.lax.broadcasted_iota(jnp.int32, (C, _LANE), 1) + base
                valid = lane < hw_true
                xs = jnp.where(valid, xc, 0.0)
                xm = jnp.where(valid, xc, -jnp.inf)
            else:
                xs, xm = xc, xc
            sum_sc[...] = sum_sc[...] + xs
            max_sc[...] = jnp.maximum(max_sc[...], xm)

        @pl.when(t == pl.num_programs(1) - 1)
        def _finalize():
            s = jnp.sum(sum_sc[...], axis=-1, keepdims=True)    # (C, 1)
            m = jnp.max(max_sc[...], axis=-1, keepdims=True)    # (C, 1)
            avg = s * inv_hw
            col = jax.lax.broadcasted_iota(jnp.int32, (C, 2), 1)
            v = jnp.where(col == 0, avg, m)                     # (C, 2)
            w1 = w1_ref[...].astype(jnp.float32)
            w2 = w2_ref[...].astype(jnp.float32)
            h = jnp.maximum(
                jnp.dot(w1, v, preferred_element_type=jnp.float32), 0.0)
            y = jnp.dot(w2, h, preferred_element_type=jnp.float32)
            att = jax.nn.sigmoid(jnp.sum(y, axis=-1, keepdims=True))
            att_ref[0] = att.astype(att_ref.dtype)

    return kernel


def _apply_kernel(att_ref, x_ref, o_ref):
    att = att_ref[0].astype(o_ref.dtype)          # (C, 1)
    o_ref[0] = att * x_ref[0]                     # broadcast over lanes


# --------------------------------------------------------------------------
# Wrapper
# --------------------------------------------------------------------------
def channel_attention(x_nchw, w1, w2, *, tile_lanes=512,
                      max_fused_bytes=_FUSED_VMEM_BUDGET):
    """x_nchw: (N, C, H, W); w1: (C//r, C); w2: (C, C//r)."""
    assert tile_lanes % _LANE == 0
    N, C, H, W = x_nchw.shape
    HW = H * W
    x = x_nchw.reshape(N, C, HW)
    hw_128 = pl.cdiv(HW, _LANE) * _LANE
    itemsize = jnp.dtype(x_nchw.dtype).itemsize

    # Per-step VMEM estimate for the fused path:
    #   in + out double-buffered (4 * native) + f32 upcast/mask temps (~3 * f32).
    fused_bytes = C * hw_128 * (4 * itemsize + 3 * 4)

    if fused_bytes <= max_fused_bytes:
        # ---------------- fused single-pass path ----------------
        pad = hw_128 - HW
        x_p = jnp.pad(x, ((0, 0), (0, 0), (0, pad))) if pad else x
        kernel = _make_fused_kernel(C, HW, hw_128, need_mask=bool(pad))
        out_p = pl.pallas_call(
            kernel,
            out_shape=jax.ShapeDtypeStruct((N, C, hw_128), x_nchw.dtype),
            grid_spec=pltpu.PrefetchScalarGridSpec(
                num_scalar_prefetch=0,
                grid=(N,),
                in_specs=[
                    pl.BlockSpec((1, C, hw_128), lambda b: (b, 0, 0)),
                    pl.BlockSpec(w1.shape, lambda b: (0, 0)),
                    pl.BlockSpec(w2.shape, lambda b: (0, 0)),
                ],
                out_specs=pl.BlockSpec((1, C, hw_128), lambda b: (b, 0, 0)),
            ),
            compiler_params=pltpu.CompilerParams(
                dimension_semantics=("parallel",),
                vmem_limit_bytes=_VMEM_LIMIT),
        )(x_p, w1, w2)
        out = out_p[:, :, :HW] if pad else out_p
        return out.reshape(N, C, H, W)

    # ---------------- two-pass fallback (large spatial) ----------------
    tile = min(tile_lanes, hw_128)                # lane-dense tile, mult of 128
    hw_pad = pl.cdiv(HW, tile) * tile
    pad = hw_pad - HW
    x_p = jnp.pad(x, ((0, 0), (0, 0), (0, pad))) if pad else x
    n_t = hw_pad // tile

    pool_kernel = _make_pool_fc_kernel(C, HW, tile, need_mask=bool(pad))

    # Pass 1: pooled stats + FC + sigmoid -> (N, C, 1) attention (f32).
    att = pl.pallas_call(
        pool_kernel,
        out_shape=jax.ShapeDtypeStruct((N, C, 1), jnp.float32),
        grid_spec=pltpu.PrefetchScalarGridSpec(
            num_scalar_prefetch=0,
            grid=(N, n_t),
            in_specs=[
                pl.BlockSpec((1, C, tile), lambda b, t: (b, 0, t)),
                pl.BlockSpec(w1.shape, lambda b, t: (0, 0)),
                pl.BlockSpec(w2.shape, lambda b, t: (0, 0)),
            ],
            out_specs=pl.BlockSpec((1, C, 1), lambda b, t: (b, 0, 0)),
            scratch_shapes=[
                pltpu.VMEM((C, _LANE), jnp.float32),   # running sum
                pltpu.VMEM((C, _LANE), jnp.float32),   # running max
            ],
        ),
        compiler_params=pltpu.CompilerParams(
            dimension_semantics=("parallel", "arbitrary"),
            vmem_limit_bytes=_VMEM_LIMIT),
    )(x_p, w1, w2)

    # Pass 2: scale x by the per-channel attention, streaming lane-dense tiles.
    out_p = pl.pallas_call(
        _apply_kernel,
        out_shape=jax.ShapeDtypeStruct((N, C, hw_pad), x_nchw.dtype),
        grid_spec=pltpu.PrefetchScalarGridSpec(
            num_scalar_prefetch=0,
            grid=(N, n_t),
            in_specs=[
                pl.BlockSpec((1, C, 1), lambda b, t: (b, 0, 0)),
                pl.BlockSpec((1, C, tile), lambda b, t: (b, 0, t)),
            ],
            out_specs=pl.BlockSpec((1, C, tile), lambda b, t: (b, 0, t)),
        ),
        compiler_params=pltpu.CompilerParams(
            dimension_semantics=("parallel", "parallel"),
            vmem_limit_bytes=_VMEM_LIMIT),
    )(att, x_p)

    out = out_p[:, :, :HW] if pad else out_p
    return out.reshape(N, C, H, W)


def channel_attention_ref(x, w1, w2):
    # Pure-JAX reference matching the PyTorch forward.
    avg = jnp.mean(x, axis=(2, 3))            # (N, C)
    mx = jnp.max(x, axis=(2, 3))              # (N, C)

    def fc(v):                                 # v: (N, C)
        h = jnp.maximum(v @ w1.T, 0.0)         # (N, C_r)
        return h @ w2.T                        # (N, C)

    att = jax.nn.sigmoid(fc(avg) + fc(mx))     # (N, C)
    return att[:, :, None, None] * x


if __name__ == "__main__":
    key = jax.random.PRNGKey(0)

    # --- Test 1: fused path, spatial a multiple of 128 (ratio=16 -> C>=16).
    N, C, H, W = 2, 64, 16, 16
    ratio = 16
    C_r = C // ratio
    kx, k1, k2, kx2, k3, k4 = jax.random.split(key, 6)

    x = jax.random.normal(kx, (N, C, H, W), dtype=jnp.float32)
    w1 = jax.random.normal(k1, (C_r, C), dtype=jnp.float32) * 0.1
    w2 = jax.random.normal(k2, (C, C_r), dtype=jnp.float32) * 0.1

    out = jax.block_until_ready(channel_attention(x, w1, w2))
    ref = channel_attention_ref(x, w1, w2)
    assert out.shape == (N, C, H, W)
    assert jnp.allclose(out, ref, atol=2e-5, rtol=1e-5), "mismatch (test 1: fused)"

    # --- Test 2: fused path, spatial NOT a multiple of 128 (pad/mask).
    N2, C2, H2, W2, ratio2 = 1, 32, 10, 10, 8
    C2_r = C2 // ratio2
    x2 = jax.random.normal(kx2, (N2, C2, H2, W2), dtype=jnp.float32)
    w1b = jax.random.normal(k3, (C2_r, C2), dtype=jnp.float32) * 0.1
    w2b = jax.random.normal(k4, (C2, C2_r), dtype=jnp.float32) * 0.1

    out2 = jax.block_until_ready(channel_attention(x2, w1b, w2b))
    ref2 = channel_attention_ref(x2, w1b, w2b)
    assert out2.shape == (N2, C2, H2, W2)
    assert jnp.allclose(out2, ref2, atol=2e-5, rtol=1e-5), "mismatch (test 2: fused+mask)"

    # --- Test 3: force the two-pass fallback path (same small shapes).
    out3 = jax.block_until_ready(channel_attention(x, w1, w2, max_fused_bytes=0))
    assert jnp.allclose(out3, ref, atol=2e-5, rtol=1e-5), "mismatch (test 3: two-pass)"

    out4 = jax.block_until_ready(channel_attention(x2, w1b, w2b, max_fused_bytes=0))
    assert jnp.allclose(out4, ref2, atol=2e-5, rtol=1e-5), "mismatch (test 4: two-pass+mask)"

    print("KERNEL_OK")
</pallas_src>

<mosaic_0001>
module attributes {stable_mosaic.version = 11 : i64} {
  func.func @kernel(%arg0: i32, %arg1: memref<1x64x256xf32, #tpu.memory_space<vmem>>, %arg2: memref<4x64xf32, #tpu.memory_space<vmem>>, %arg3: memref<64x4xf32, #tpu.memory_space<vmem>>, %arg4: memref<1x64x256xf32, #tpu.memory_space<vmem>>) attributes {dimension_semantics = [#tpu.dimension_semantics<parallel>], iteration_bounds = array<i64: 2>, scalar_prefetch = 0 : i64, scratch_operands = 0 : i64, tpu.core_type = #tpu.core_type<tc>, window_params = [{transform_indices = @transform_0, window_bounds = array<i64: 1, 64, 256>}, {pipeline_mode = #tpu.pipeline_mode<synchronous>, transform_indices = @transform_1, window_bounds = array<i64: 4, 64>}, {pipeline_mode = #tpu.pipeline_mode<synchronous>, transform_indices = @transform_2, window_bounds = array<i64: 64, 4>}, {transform_indices = @transform_3, window_bounds = array<i64: 1, 64, 256>}]} {
    %c0 = arith.constant 0 : index
    %c0_0 = arith.constant 0 : index
    %c0_1 = arith.constant 0 : index
    %0 = vector.load %arg1[%c0, %c0_0, %c0_1] : memref<1x64x256xf32, #tpu.memory_space<vmem>>, vector<1x64x256xf32>
    %1 = vector.shape_cast %0 : vector<1x64x256xf32> to vector<64x256xf32>
    %cst = arith.constant dense<0.000000e+00> : vector<64xf32>
    %2 = vector.multi_reduction <add>, %1, %cst [1] : vector<64x256xf32> to vector<64xf32>
    %3 = vector.shape_cast %2 : vector<64xf32> to vector<64x1xf32>
    %cst_2 = arith.constant dense<0xFF800000> : vector<64xf32>
    %4 = vector.multi_reduction <maximumf>, %1, %cst_2 [1] : vector<64x256xf32> to vector<64xf32>
    %5 = vector.shape_cast %4 : vector<64xf32> to vector<64x1xf32>
    %cst_3 = arith.constant 3.906250e-03 : f32
    %6 = vector.broadcast %cst_3 : f32 to vector<64x1xf32>
    %7 = arith.mulf %3, %6 : vector<64x1xf32>
    %8 = tpu.iota {dimensions = array<i32: 1>} : vector<64x2xi32>
    %c0_i32 = arith.constant 0 : i32
    %9 = vector.broadcast %c0_i32 : i32 to vector<64x2xi32>
    %10 = arith.cmpi eq, %8, %9 : vector<64x2xi32>
    %11 = vector.shape_cast %7 : vector<64x1xf32> to vector<64x1xf32>
    %12 = vector.broadcast %11 : vector<64x1xf32> to vector<64x2xf32>
    %13 = vector.shape_cast %5 : vector<64x1xf32> to vector<64x1xf32>
    %14 = vector.broadcast %13 : vector<64x1xf32> to vector<64x2xf32>
    %15 = arith.select %10, %12, %14 : vector<64x2xi1>, vector<64x2xf32>
    %c0_4 = arith.constant 0 : index
    %c0_5 = arith.constant 0 : index
    %16 = vector.load %arg2[%c0_4, %c0_5] : memref<4x64xf32, #tpu.memory_space<vmem>>, vector<4x64xf32>
    %c0_6 = arith.constant 0 : index
    %c0_7 = arith.constant 0 : index
    %17 = vector.load %arg3[%c0_6, %c0_7] : memref<64x4xf32, #tpu.memory_space<vmem>>, vector<64x4xf32>
    %cst_8 = arith.constant dense<0.000000e+00> : vector<4x2xf32>
    %18 = tpu.matmul %16, %15, %cst_8 {dimension_numbers = #tpu.dot_dimension_numbers<[1], [0], [0], [1], [0, 0, 1, 1], [], []>} : vector<4x64xf32>, vector<64x2xf32>, vector<4x2xf32> -> vector<4x2xf32>
    %cst_9 = arith.constant 0.000000e+00 : f32
    %19 = vector.broadcast %cst_9 : f32 to vector<4x2xf32>
    %20 = arith.maximumf %18, %19 : vector<4x2xf32>
    %cst_10 = arith.constant dense<0.000000e+00> : vector<64x2xf32>
    %21 = tpu.matmul %17, %20, %cst_10 {dimension_numbers = #tpu.dot_dimension_numbers<[1], [0], [0], [1], [0, 0, 1, 1], [], []>} : vector<64x4xf32>, vector<4x2xf32>, vector<64x2xf32> -> vector<64x2xf32>
    %cst_11 = arith.constant dense<0.000000e+00> : vector<64xf32>
    %22 = vector.multi_reduction <add>, %21, %cst_11 [1] : vector<64x2xf32> to vector<64xf32>
    %23 = vector.shape_cast %22 : vector<64xf32> to vector<64x1xf32>
    %24 = arith.negf %23 : vector<64x1xf32>
    %25 = math.exp %24 : vector<64x1xf32>
    %cst_12 = arith.constant 1.000000e+00 : f32
    %26 = vector.broadcast %cst_12 : f32 to vector<64x1xf32>
    %27 = arith.addf %26, %25 : vector<64x1xf32>
    %28 = arith.divf %26, %27 : vector<64x1xf32>
    %c0_13 = arith.constant 0 : index
    %c0_14 = arith.constant 0 : index
    %c0_15 = arith.constant 0 : index
    %29 = vector.load %arg1[%c0_13, %c0_14, %c0_15] : memref<1x64x256xf32, #tpu.memory_space<vmem>>, vector<1x64x256xf32>
    %30 = vector.shape_cast %29 : vector<1x64x256xf32> to vector<64x256xf32>
    %31 = vector.broadcast %28 : vector<64x1xf32> to vector<64x256xf32>
    %32 = arith.mulf %31, %30 : vector<64x256xf32>
    %c0_16 = arith.constant 0 : index
    %c0_17 = arith.constant 0 : index
    %c0_18 = arith.constant 0 : index
    %33 = vector.load %arg4[%c0_16, %c0_17, %c0_18] : memref<1x64x256xf32, #tpu.memory_space<vmem>>, vector<1x64x256xf32>
    %34 = vector.shape_cast %33 : vector<1x64x256xf32> to vector<64x256xf32>
    %35 = vector.shape_cast %32 : vector<64x256xf32> to vector<1x64x256xf32>
    tpu.vector_store %arg4[%c0_16, %c0_17, %c0_18], %35 {strides = array<i32>} : memref<1x64x256xf32, #tpu.memory_space<vmem>>, vector<1x64x256xf32>,
    return
  }
  func.func @transform_0(%arg0: i32) -> (i32, i32, i32) {
    %c0_i32 = arith.constant 0 : i32
    %c0_i32_0 = arith.constant 0 : i32
    %c0_i32_1 = arith.constant 0 : i32
    return %arg0, %c0_i32, %c0_i32_0 : i32, i32, i32
  }
  func.func @transform_1(%arg0: i32) -> (i32, i32) {
    %c0_i32 = arith.constant 0 : i32
    %c0_i32_0 = arith.constant 0 : i32
    %c0_i32_1 = arith.constant 0 : i32
    return %c0_i32, %c0_i32_0 : i32, i32
  }
  func.func @transform_2(%arg0: i32) -> (i32, i32) {
    %c0_i32 = arith.constant 0 : i32
    %c0_i32_0 = arith.constant 0 : i32
    %c0_i32_1 = arith.constant 0 : i32
    return %c0_i32, %c0_i32_0 : i32, i32
  }
  func.func @transform_3(%arg0: i32) -> (i32, i32, i32) {
    %c0_i32 = arith.constant 0 : i32
    %c0_i32_0 = arith.constant 0 : i32
    %c0_i32_1 = arith.constant 0 : i32
    return %arg0, %c0_i32, %c0_i32_0 : i32, i32, i32
  }
}

</mosaic_0001>

<bundles_post_ra>
// kernel: tpu_custom_call.1
= control target key start
LH: loop header
LB: loop body
LE: loop exit
PB: predicated region body
PF: predicated region fallthrough
CT: control target
= control target key end

     0   :  { %8 = vsyncpa [#allocation3], 0  ;;  %s1325_s0 = inlined_call_operand.hbm [shape: f32[2,64,256], index: 0, kind: input, shape index: {}]   ;;  %s1326_s1 = inlined_call_operand.vmem [shape: f32[4,64], index: 1, kind: input, shape index: {}]   ;;  %s1327_s2 = inlined_call_operand.vmem [shape: f32[64,4], index: 2, kind: input, shape index: {}]   ;;  %s1328_s3 = inlined_call_operand.hbm [shape: f32[2,64,256], index: 3, kind: output, shape index: {}]  }
   0x1   :  { %10 = vsyncpa [#allocation3 + $0x1], 0 }
   0x2   :  { %11 = vsyncpa [#allocation4], 0 }
   0x3   :  { %13 = vsyncpa [#allocation4 + $0x1], 0  ;;  %s991_s12 = smov 0   ;;  %s993_s13 = smov 0  }
   0x4   :  { %s995_s14 = smov 0   ;;  %s997_s15 = smov 0  }
   0x5 LB: > { %s1012_s16 = sadd.s32 4294967295, %s960_s15   ;;  %s682_s17 = sadd.s32 4294967294, %s960_s15   ;;  %s960_s15 = sphi %s997_s15, %s1341_s15   ;;  %s956_s14 = sphi %s995_s14, %s1340_s14   ;;  %s952_s13 = sphi %s993_s13, %s1339_s13   ;;  %s948_s12 = sphi %s991_s12, %s1338_s12  }
   0x6   : > { %s1016_s18 = sadd.s32 1, %s960_s15   ;;  %s26_s19 = sadd.s32 1, %s956_s14 }
   0x7   : > { %s23_s20 = ssub.s32 %s960_s15, %s1016_s18  ;;  %p33_p0 = scmp.ne.s32.totalorder %s956_s14, %s952_s13 }
   0x8   : > { %p24_p1 = scmp.eq.s32.totalorder %s23_s20, 0  ;;  %p34_p2 = scmp.eq.s32.totalorder %s960_s15, 0 }
   0x9   : > { %p39_p3 = scmp.ne.s32.totalorder %s952_s13, %s948_s12  ;;  %p40_p4 = scmp.eq.s32.totalorder %s1012_s16, 0 }
   0xa   : > { %s1028_s21 = scalar_select %p24_p1, %s956_s14, %s26_s19  }
   0xb   : > { %p1030_p5 = por %p34_p2, %p33_p0  ;;  %p1034_p6 = por %p40_p4, %p39_p3 }
   0xc   : > { %p105_p7 = scmp.eq.s32.totalorder %s1012_s16, 1  ;;  %p111_p8 = scmp.eq.s32.totalorder %s682_s17, 1 }
   0xd   : > { %p791_p10 = scmp.lt.s32.totalorder %s960_s15, 2  ;;  %s137_s26 = sand.u32 1, %s956_s14  }
   0xe   : > { %p1041_p11 = por %p105_p7, %p33_p0  ;;  %p1045_p12 = por %p111_p8, %p39_p3 }
   0xf   : > { %s714_s27 = sshll.u32 %s960_s15, 11  ;;  %s685_s28 = sshll.u32 %s137_s26, 7 }
  0x10   : > { %s1332_s24 = scalar_select %p1041_p11, 1, 0 }
  0x11   : > { %s1333_s25 = scalar_select %p1045_p12, 1, 0 }
  0x12   : > { %s1054_s4 = scalar_lea.hbm %s1325_s0, %s714_s27  ;;  %s141_s5 = scalar_lea.vmem [#allocation2], %s685_s28 }
  0x13   : > { %s148_s6 = sshll.u32 %s141_s5, 4  ;;  %p1058_p13 = pnand %p791_p10, %p1030_p5  ;;  %s1062_s6 = int_to_ptr.vmem [resolvable:$true] %s148_s6 }
  0x14   : > { %s1064_s8 = scalar_lea.sflag [#allocation3], %s137_s26  ;;  %s864_s9 = scalar_lea.hbm %s1054_s4, 2048 }
  0x15   : > { %p865_p0 = scmp.ne.s32.totalorder %s1054_s4, %s864_s9  ;;  %p866_p1 = pneg %p1058_p13 }
  0x16   : > { %s869_s17 = scalar_lea.hbm %s1325_s0, 4096  ;;  %p870_p4 = scmp.lt.u32.totalorder %s1054_s4, %s1325_s0 }
  0x17   : > { %p867_p2 = pnand %p866_p1, %p865_p0  ;;  %p871_p5 = scmp.lt.u32.totalorder %s869_s17, %s864_s9 }
  0x18   : > { %p873_p8 = scmp.lt.u32.totalorder %s864_s9, %s1054_s4 }
  0x19   : > { %p868_p3 = pneg %p867_p2  ;;  %p872_p7 = por %p871_p5, %p870_p4 }
  0x1b   : > { %p874_p10 = por %p873_p8, %p872_p7 }
  0x1d   : > { %p875_p9 = pnand %p874_p10, %p868_p3 }
  0x1f   : > { %878 = shalt.err (!%p875_p9)
}
  0x20   : > { %s879_s22 = scalar_lea.vmem %s1062_s6, 2048  ;;  %s962_s26 = smov [#allocation2]  }
  0x21   : > { %p880_p0 = scmp.ne.s32.totalorder %s1062_s6, %s879_s22  ;;  %s884_s27 = sshll.u32 %s962_s26, 4  ;;  %s885_s27 = int_to_ptr.vmem [resolvable:$false] %s884_s27 }
  0x22   : > { %s886_s28 = scalar_lea.vmem %s885_s27, 4096  ;;  %p887_p11 = scmp.lt.s32.totalorder %s1062_s6, %s885_s27 }
  0x23   : > { %p882_p2 = pnand %p880_p0, %p866_p1  ;;  %p888_p4 = scmp.lt.s32.totalorder %s886_s28, %s879_s22 }
  0x25   : > { %p883_p12 = pneg %p882_p2  ;;  %p889_p5 = por %p888_p4, %p887_p11 }
  0x27   : > { %p890_p7 = pnand %p889_p5, %p883_p12 }
  0x29   : > { %893 = shalt.err (!%p890_p7)
}
  0x2a   : > { %s963_s29 = smov 256   ;;  %s964_s30 = smov 16  }
  0x2b   : > { %786 = dma.hbm_to_vmem [thread:$0]  (!%p1058_p13), %s1054_s4, 2048, %s1062_s6, %s1064_s8, %s963_s29, %s963_s29, %s964_s30  }
  0x2c   : > { %p688_p9 = scmp.ge.s32.totalorder %s960_s15, 1  ;;  %p156_p1 = scmp.lt.s32.totalorder %s960_s15, 3 }
  0x2e   : > { %p157_p3 = pnand %p688_p9, %p156_p1 }
  0x2f   : > { %s1095_s5 = sand.u32 (!%p157_p3), 1, %s952_s13  }
  0x30   : > { %160 = sbr.rel (%p157_p3) target bundleno = 864 (0x360), region = 32  ;;  %s689_s9 = sshll.u32 (!%p157_p3), %s1095_s5, 7 }
  0x31   : > { %s163_s10 = scalar_lea.sflag (!%p157_p3), [#allocation3], %s1095_s5  ;;  %s1101_s11 = scalar_lea.vmem (!%p157_p3), [#allocation2], %s689_s9 }
  0x37   : > { %939 = dma.done.wait (%p1034_p6), %s163_s10, 2048  }
  0x38   : > { %941 = vsyncadd (%p1034_p6), %s163_s10, 4294965248  ;;  %v1108_v0 = vld [vmem:[%s1101_s11] sm:$0xff]  ;;  %v1111_v1 = vld [vmem:[%s1101_s11 + $0x8] sm:$0xff]  ;;  %v965_v30 = vmov 0.0|0.0   ;;  %vm966_vm0 = vmmov 0   ;;  %v967_v33 = vmov 0.0   ;;  %v261_v34 = vlaneseq }
  0x39   : > { %v1114_v2 = vld [vmem:[%s1101_s11 + $0x10] sm:$0xff]  ;;  %v229_v3 = vmax.f32 %v1108_v0, %v1111_v1  ;;  %v205_v4 = vadd.f32 %v1111_v1, %v1108_v0  ;;  %v1121_v5 = vld [vmem:[%s1101_s11 + $0x18] sm:$0xff]  ;;  %v1134_v10 = vld [vmem:[%s1101_s11 + $0x20] sm:$0xff]  ;;  %767 = vmatprep.subr.bf16.mxu0 %v965_v30  ;;  %750 = vmatprep.mubr.msk.f32.mxu0 %vm966_vm0, %v967_v33  ;;  %vm281_vm2 = vcmask 523264   ;;  %vm356_vm3 = vcmask 31744   ;;  %s1244_s6 = scalar_lea.vmem [#allocation5], %s689_s9 }
  0x3a   : > { %v232_v6 = vmax.f32 %v1114_v2, %v1121_v5  ;;  %v208_v7 = vadd.f32 %v1121_v5, %v1114_v2  ;;  %v1128_v8 = vld [vmem:[%s1101_s11 + $0x30] sm:$0xff]  ;;  %v1131_v9 = vld [vmem:[%s1101_s11 + $0x38] sm:$0xff]  ;;  %v1137_v11 = vld [vmem:[%s1101_s11 + $0x28] sm:$0xff]  ;;  %v262_v37 = vand.u32 127, %v261_v34  ;;  %vm381_vm4 = vcmask 1043456   ;;  %s715_s9 = sshll.u32 %s1012_s16, 11 }
  0x3b   : > { %230 = vmax.xlane.f32.xlu1 %v229_v3  ;;  %206 = vadd.xlane.f32.xlu0 %v205_v4  ;;  %v214_v12 = vadd.f32 %v1131_v9, %v1128_v8  ;;  %v211_v13 = vadd.f32 %v1137_v11, %v1134_v10  ;;  %v238_v14 = vmax.f32 %v1128_v8, %v1131_v9  ;;  %v1148_v16 = vld [vmem:[%s1101_s11 + $0x50] sm:$0xff]  ;;  %v1151_v17 = vld [vmem:[%s1101_s11 + $0x58] sm:$0xff]  ;;  %v1154_v18 = vld [vmem:[%s1101_s11 + $0x40] sm:$0xff]  ;;  %vm490_vm5 = vcmask 15360   ;;  %s609_s7 = sshll.u32 %s1244_s6, 4  ;;  %s1275_s19 = scalar_lea.hbm %s1328_s3, %s715_s9  ;;  %s1277_s7 = int_to_ptr.vmem [resolvable:$true] %s609_s7 }
  0x3c   : > { %v235_v15 = vmax.f32 %v1134_v10, %v1137_v11  ;;  %v1157_v19 = vld [vmem:[%s1101_s11 + $0x48] sm:$0xff]  ;;  %v220_v20 = vadd.f32 %v1151_v17, %v1148_v16  ;;  %v244_v22 = vmax.f32 %v1148_v16, %v1151_v17  ;;  %v1168_v24 = vld [vmem:[%s1101_s11 + $0x70] sm:$0xff]  ;;  %v1171_v25 = vld [vmem:[%s1101_s11 + $0x78] sm:$0xff]  ;;  %vm263_vm1 = vcmp.eq.s32.totalorder %v262_v37, 0  ;;  %s596_s16 = scalar_lea.sflag [#allocation4], %s1095_s5  ;;  %s894_s20 = scalar_lea.vmem %s1277_s7, 2048 }
  0x3d   : > { %v217_v21 = vadd.f32 %v1157_v19, %v1154_v18  ;;  %v241_v23 = vmax.f32 %v1154_v18, %v1157_v19  ;;  %v1174_v26 = vld [vmem:[%s1101_s11 + $0x60] sm:$0xff]  ;;  %v1177_v27 = vld [vmem:[%s1101_s11 + $0x68] sm:$0xff]  ;;  %v226_v28 = vadd.f32 %v1171_v25, %v1168_v24  ;;  %v250_v31 = vmax.f32 %v1168_v24, %v1171_v25  ;;  %v279_v34 = vld [vmem:[%s1327_s2 + $0x30] sm:$0xff]  ;;  %p895_p6 = scmp.ne.s32.totalorder %s1277_s7, %s894_s20  ;;  %p1335_p11 = scmp.ne.s32.totalorder %s1332_s24, 0 }
  0x3e   : > { %v223_v29 = vadd.f32 %v1177_v27, %v1174_v26  ;;  %v247_v32 = vmax.f32 %v1174_v26, %v1177_v27  ;;  %v278_v33 = vld [vmem:[%s1327_s2 + $0x28] sm:$0xff]  ;;  %s968_s22 = smov [#allocation5]  }
  0x3f   : > { %233 = vmax.xlane.f32.xlu1 %v232_v6  ;;  %209 = vadd.xlane.f32.xlu0 %v208_v7  ;;  %p896_p12 = pnand %p895_p6, %p1335_p11  ;;  %s898_s26 = sshll.u32 %s968_s22, 4  ;;  %s899_s26 = int_to_ptr.vmem [resolvable:$false] %s898_s26 }
  0x40   : > { %s900_s27 = scalar_lea.vmem %s899_s26, 4096  ;;  %p901_p8 = scmp.lt.s32.totalorder %s1277_s7, %s899_s26 }
  0x41   : > { %p897_p13 = pneg %p896_p12  ;;  %p902_p10 = scmp.lt.s32.totalorder %s900_s27, %s894_s20 }
  0x43   : > { %215 = vadd.xlane.f32.xlu1 %v214_v12  ;;  %212 = vadd.xlane.f32.xlu0 %v211_v13  ;;  %p903_p0 = por %p902_p10, %p901_p8 }
  0x45   : > { %p904_p2 = pnand %p903_p0, %p897_p13 }
  0x47   : > { %239 = vmax.xlane.f32.xlu1 %v238_v14  ;;  %236 = vmax.xlane.f32.xlu0 %v235_v15 }
  0x4b   : > { %221 = vadd.xlane.f32.xlu1 %v220_v20  ;;  %218 = vadd.xlane.f32.xlu0 %v217_v21  ;;  %v272_v20 = vld [vmem:[%s1326_s1] sm:$0xf] }
  0x4c   : > { %v273_v21 = vld [vmem:[%s1327_s2] sm:$0xff] }
  0x4d   : > { %755 = vmatprep.mubr.msk.f32.mxu1 %vm356_vm3, %v273_v21 }
  0x4f   : > { %245 = vmax.xlane.f32.xlu1 %v244_v22  ;;  %242 = vmax.xlane.f32.xlu0 %v241_v23 }
  0x53   : > { %227 = vadd.xlane.f32.xlu1 %v226_v28  ;;  %224 = vadd.xlane.f32.xlu0 %v223_v29  ;;  %v274_v29 = vld [vmem:[%s1327_s2 + $0x8] sm:$0xff] }
  0x57   : > { %251 = vmax.xlane.f32.xlu1 %v250_v31  ;;  %248 = vmax.xlane.f32.xlu0 %v247_v32  ;;  %v276_v31 = vld [vmem:[%s1327_s2 + $0x18] sm:$0xff]  ;;  %v277_v32 = vld [vmem:[%s1327_s2 + $0x20] sm:$0xff] }
  0xc8   : > { %v231_v35 = vpop.xlane.xlu1 %230  ;;  %v207_v36 = vpop.xlane.xlu0 %206 }
  0xc9   : > { %v253_v38 = vmul.f32 0.00390625, %v207_v36 }
  0xcb   : > { %v264_v42 = vsel %vm263_vm1, %v253_v38, %v231_v35  ;;  %v280_v35 = vld [vmem:[%s1327_s2 + $0x38] sm:$0xff] }
  0xcc   : > { %v234_v39 = vpop.xlane.xlu1 %233  ;;  %v210_v40 = vpop.xlane.xlu0 %209 }
  0xcd   : > { %v254_v41 = vmul.f32 0.00390625, %v210_v40 }
  0xcf   : > { %v265_v43 = vsel %vm263_vm1, %v254_v41, %v234_v39 }
  0xd0   : > { %v216_v44 = vpop.xlane.xlu1 %215  ;;  %v213_v45 = vpop.xlane.xlu0 %212  ;;  %v768_v46 = vpack.c.bf16 %v265_v43, %v264_v42 }
  0xd1   : > { %v256_v47 = vmul.f32 0.00390625, %v216_v44  ;;  %v255_v48 = vmul.f32 0.00390625, %v213_v45 }
  0xd2   : > { %769 = vmatpush3.bf16.msra.mxu0 %v768_v46 }
  0xd3   : > { %770 = vmatprep.subr.bf16.mxu0 %v965_v30 }
  0xd4   : > { %v240_v49 = vpop.xlane.xlu1 %239  ;;  %v237_v50 = vpop.xlane.xlu0 %236 }
  0xd5   : > { %v267_v51 = vsel %vm263_vm1, %v256_v47, %v240_v49  ;;  %v266_v52 = vsel %vm263_vm1, %v255_v48, %v237_v50 }
  0xd6   : > { %v771_v53 = vpack.c.bf16 %v267_v51, %v266_v52 }
  0xd8   : > { %v222_v54 = vpop.xlane.xlu1 %221  ;;  %772 = vmatpush3.bf16.msra.mxu0 %v771_v53  ;;  %v219_v55 = vpop.xlane.xlu0 %218 }
  0xd9   : > { %773 = vmatprep.subr.bf16.mxu0 %v965_v30  ;;  %v258_v56 = vmul.f32 0.00390625, %v222_v54  ;;  %v257_v57 = vmul.f32 0.00390625, %v219_v55 }
  0xdc   : > { %v246_v58 = vpop.xlane.xlu1 %245  ;;  %v243_v59 = vpop.xlane.xlu0 %242 }
  0xdd   : > { %v269_v60 = vsel %vm263_vm1, %v258_v56, %v246_v58  ;;  %v268_v61 = vsel %vm263_vm1, %v257_v57, %v243_v59 }
  0xde   : > { %v774_v62 = vpack.c.bf16 %v269_v60, %v268_v61 }
  0xe0   : > { %v228_v63 = vpop.xlane.xlu1 %227  ;;  %775 = vmatpush3.bf16.msra.mxu0 %v774_v62  ;;  %v225_v3 = vpop.xlane.xlu0 %224 }
  0xe1   : > { %776 = vmatprep.subr.bf16.mxu0 %v965_v30  ;;  %v260_v4 = vmul.f32 0.00390625, %v228_v63  ;;  %v259_v6 = vmul.f32 0.00390625, %v225_v3  ;;  %v275_v30 = vld [vmem:[%s1327_s2 + $0x10] sm:$0xff] }
  0xe4   : > { %v252_v7 = vpop.xlane.xlu1 %251  ;;  %v249_v12 = vpop.xlane.xlu0 %248 }
  0xe5   : > { %v271_v13 = vsel %vm263_vm1, %v260_v4, %v252_v7  ;;  %v270_v14 = vsel %vm263_vm1, %v259_v6, %v249_v12 }
  0xe6   : > { %v777_v15 = vpack.c.bf16 %v271_v13, %v270_v14 }
  0xe8   : > { %778 = vmatpush3.bf16.msra.mxu0 %v777_v15 }
  0xeb   : > { %751 = vmatmul.mubr.msk.f32.vlgmr.msra.gmra.mrb[0].mxu0 %vm281_vm2, %v272_v20 }
 0x1be   : > { %v351_v22 = vpop.f32.mrb[0].mxu0 }
 0x1bf   : > { %v355_v23 = vmax.f32 %v351_v22, 0.0  ;;  %v752_v28 = vpop.f32.mrb[1].mxu0 }
 0x1c1   : > { %753 = vmatprep.subr.msk.mxu1 %vm381_vm4, %v355_v23 }
 0x1c2   : > { %754 = vmatpush3.msk.msra.mxu1 %vm381_vm4, %v355_v23 }
 0x1c3   : > { %756 = vmatmul.mubr.msk.f32.vlgmr.msra.gmra.mrb[0].mxu1 %vm356_vm3, %v274_v29 }
 0x1c4   : > { %758 = vmatprep.mubr.msk.f32.mxu1 %vm356_vm3, %v275_v30 }
 0x1c7   : > { %759 = vmatmul.mubr.msk.f32.gmra.mrb[2].mxu1 %vm356_vm3, %v276_v31 }
 0x1c8   : > { %761 = vmatprep.mubr.msk.f32.mxu1 %vm356_vm3, %v277_v32 }
 0x1cb   : > { %762 = vmatmul.mubr.msk.f32.gmra.mrb[4].mxu1 %vm356_vm3, %v278_v33 }
 0x1cc   : > { %764 = vmatprep.mubr.msk.f32.mxu1 %vm356_vm3, %v279_v34 }
 0x1cf   : > { %765 = vmatmul.mubr.msk.f32.gmra.mrb[6].mxu1 %vm356_vm3, %v280_v35 }
 0x296   : > { %v757_v36 = vpop.f32.mrb[0].mxu1 }
 0x297   : > { %v451_v37 = vpop.f32.mrb[1].mxu1  ;;  %v494_v38 = vsel %vm490_vm5, %v757_v36, 0.0 }
 0x298   : > { %495 = vadd.xlane.f32.xlu1 %v494_v38  ;;  %v491_v39 = vsel %vm490_vm5, %v451_v37, 0.0 }
 0x299   : > { %492 = vadd.xlane.f32.xlu0 %v491_v39 }
 0x29a   : > { %v760_v40 = vpop.f32.mrb[2].mxu1 }
 0x29b   : > { %v461_v41 = vpop.f32.mrb[3].mxu1  ;;  %v500_v42 = vsel %vm490_vm5, %v760_v40, 0.0 }
 0x29c   : > { %501 = vadd.xlane.f32.xlu1 %v500_v42  ;;  %v497_v43 = vsel %vm490_vm5, %v461_v41, 0.0 }
 0x29d   : > { %498 = vadd.xlane.f32.xlu0 %v497_v43 }
 0x29e   : > { %v763_v44 = vpop.f32.mrb[4].mxu1 }
 0x29f   : > { %v471_v45 = vpop.f32.mrb[5].mxu1  ;;  %v506_v46 = vsel %vm490_vm5, %v763_v44, 0.0 }
 0x2a0   : > { %507 = vadd.xlane.f32.xlu1 %v506_v46  ;;  %v503_v47 = vsel %vm490_vm5, %v471_v45, 0.0 }
 0x2a1   : > { %504 = vadd.xlane.f32.xlu0 %v503_v47 }
 0x2a2   : > { %v766_v48 = vpop.f32.mrb[6].mxu1 }
 0x2a3   : > { %v481_v49 = vpop.f32.mrb[7].mxu1  ;;  %v512_v50 = vsel %vm490_vm5, %v766_v48, 0.0 }
 0x2a4   : > { %513 = vadd.xlane.f32.xlu1 %v512_v50  ;;  %v509_v51 = vsel %vm490_vm5, %v481_v49, 0.0 }
 0x2a5   : > { %510 = vadd.xlane.f32.xlu0 %v509_v51 }
 0x325   : > { %v496_v52 = vpop.xlane.xlu1 %495 }
 0x326   : > { %v702_v53 = vmul.f32 -1.442695, %v496_v52  ;;  %v493_v54 = vpop.xlane.xlu0 %492 }
 0x327   : > { %v701_v55 = vmul.f32 -1.442695, %v493_v54 }
 0x328   : > { %832 = vpow2.f32 %v702_v53 }
 0x329   : > { %834 = vpow2.f32 %v701_v55  ;;  %v502_v56 = vpop.xlane.xlu1 %501 }
 0x32a   : > { %v704_v57 = vmul.f32 -1.442695, %v502_v56  ;;  %v499_v58 = vpop.xlane.xlu0 %498 }
 0x32b   : > { %v703_v59 = vmul.f32 -1.442695, %v499_v58 }
 0x32c   : > { %836 = vpow2.f32 %v704_v57 }
 0x32d   : > { %838 = vpow2.f32 %v703_v59  ;;  %v508_v60 = vpop.xlane.xlu1 %507 }
 0x32e   : > { %v706_v61 = vmul.f32 -1.442695, %v508_v60  ;;  %v505_v62 = vpop.xlane.xlu0 %504 }
 0x32f   : > { %v705_v63 = vmul.f32 -1.442695, %v505_v62 }
 0x330   : > { %840 = vpow2.f32 %v706_v61 }
 0x331   : > { %842 = vpow2.f32 %v705_v63  ;;  %v514_v3 = vpop.xlane.xlu1 %513 }
 0x332   : > { %v833_v4 = vpop.eup %832  ;;  %v708_v6 = vmul.f32 -1.442695, %v514_v3  ;;  %v511_v7 = vpop.xlane.xlu0 %510 }
 0x333   : > { %v835_v12 = vpop.eup %834  ;;  %v540_v13 = vadd.f32 1.0, %v833_v4  ;;  %v707_v14 = vmul.f32 -1.442695, %v511_v7 }
 0x334   : > { %v539_v15 = vadd.f32 1.0, %v835_v12  ;;  %844 = vpow2.f32 %v708_v6 }
 0x335   : > { %846 = vrcp.f32 %v540_v13 }
 0x336   : > { %v837_v20 = vpop.eup %836  ;;  %848 = vrcp.f32 %v539_v15 }
 0x337   : > { %v839_v21 = vpop.eup %838  ;;  %v542_v22 = vadd.f32 1.0, %v837_v20  ;;  %850 = vpow2.f32 %v707_v14 }
 0x338   : > { %v541_v23 = vadd.f32 1.0, %v839_v21 }
 0x339   : > { %852 = vrcp.f32 %v542_v22 }
 0x33a   : > { %v841_v28 = vpop.eup %840  ;;  %854 = vrcp.f32 %v541_v23 }
 0x33b   : > { %v843_v29 = vpop.eup %842  ;;  %v544_v30 = vadd.f32 1.0, %v841_v28 }
 0x33c   : > { %v543_v31 = vadd.f32 1.0, %v843_v29 }
 0x33d   : > { %856 = vrcp.f32 %v544_v30 }
 0x33e   : > { %v845_v32 = vpop.eup %844  ;;  %858 = vrcp.f32 %v543_v31 }
 0x33f   : > { %v847_v33 = vpop.eup %846  ;;  %v546_v34 = vadd.f32 1.0, %v845_v32 }
 0x340   : > { %v849_v35 = vpop.eup %848  ;;  %v565_v36 = vmul.f32 %v847_v33, %v1114_v2  ;;  %v566_v37 = vmul.f32 %v847_v33, %v1121_v5 }
 0x341   : > { %v851_v38 = vpop.eup %850  ;;  %v563_v39 = vmul.f32 %v849_v35, %v1108_v0  ;;  %v564_v40 = vmul.f32 %v849_v35, %v1111_v1  ;;  %860 = vrcp.f32 %v546_v34 }
 0x342   : > { %581 = vst [vmem:[%s1244_s6 + $0x10] sm:$0xff] %v565_v36  ;;  %582 = vst [vmem:[%s1244_s6 + $0x18] sm:$0xff] %v566_v37  ;;  %v545_v2 = vadd.f32 1.0, %v851_v38 }
 0x343   : > { %v853_v5 = vpop.eup %852  ;;  %579 = vst [vmem:[%s1244_s6] sm:$0xff] %v563_v39  ;;  %580 = vst [vmem:[%s1244_s6 + $0x8] sm:$0xff] %v564_v40 }
 0x344   : > { %v855_v0 = vpop.eup %854  ;;  %v569_v1 = vmul.f32 %v853_v5, %v1128_v8  ;;  %v570_v41 = vmul.f32 %v853_v5, %v1131_v9  ;;  %862 = vrcp.f32 %v545_v2 }
 0x345   : > { %v567_v42 = vmul.f32 %v855_v0, %v1134_v10  ;;  %v568_v43 = vmul.f32 %v855_v0, %v1137_v11 }
 0x346   : > { %585 = vst [vmem:[%s1244_s6 + $0x30] sm:$0xff] %v569_v1  ;;  %586 = vst [vmem:[%s1244_s6 + $0x38] sm:$0xff] %v570_v41 }
 0x347   : > { %v857_v44 = vpop.eup %856  ;;  %583 = vst [vmem:[%s1244_s6 + $0x20] sm:$0xff] %v567_v42  ;;  %584 = vst [vmem:[%s1244_s6 + $0x28] sm:$0xff] %v568_v43 }
 0x348   : > { %v859_v45 = vpop.eup %858  ;;  %v573_v8 = vmul.f32 %v857_v44, %v1148_v16  ;;  %v574_v9 = vmul.f32 %v857_v44, %v1151_v17 }
 0x349   : > { %v571_v46 = vmul.f32 %v859_v45, %v1154_v18  ;;  %v572_v10 = vmul.f32 %v859_v45, %v1157_v19 }
 0x34a   : > { %589 = vst [vmem:[%s1244_s6 + $0x50] sm:$0xff] %v573_v8  ;;  %590 = vst [vmem:[%s1244_s6 + $0x58] sm:$0xff] %v574_v9 }
 0x34b   : > { %v861_v11 = vpop.eup %860  ;;  %587 = vst [vmem:[%s1244_s6 + $0x40] sm:$0xff] %v571_v46  ;;  %588 = vst [vmem:[%s1244_s6 + $0x48] sm:$0xff] %v572_v10 }
 0x34c   : > { %v577_v47 = vmul.f32 %v861_v11, %v1168_v24  ;;  %v578_v16 = vmul.f32 %v861_v11, %v1171_v25 }
 0x34e   : > { %v863_v17 = vpop.eup %862  ;;  %593 = vst [vmem:[%s1244_s6 + $0x70] sm:$0xff] %v577_v47  ;;  %594 = vst [vmem:[%s1244_s6 + $0x78] sm:$0xff] %v578_v16 }
 0x34f   : > { %v575_v18 = vmul.f32 %v863_v17, %v1174_v26  ;;  %v576_v19 = vmul.f32 %v863_v17, %v1177_v27 }
 0x351   : > { %591 = vst [vmem:[%s1244_s6 + $0x60] sm:$0xff] %v575_v18  ;;  %592 = vst [vmem:[%s1244_s6 + $0x68] sm:$0xff] %v576_v19 }
 0x352   : > { %907 = shalt.err (!%p904_p2)
}
 0x353   : > { %s908_s28 = scalar_lea.hbm %s1275_s19, 2048  ;;  %s912_s10 = scalar_lea.hbm %s1328_s3, 4096 }
 0x354   : > { %p909_p4 = scmp.ne.s32.totalorder %s1275_s19, %s908_s28  ;;  %p913_p9 = scmp.lt.u32.totalorder %s1275_s19, %s1328_s3 }
 0x355   : > { %p914_p1 = scmp.lt.u32.totalorder %s912_s10, %s908_s28  ;;  %p916_p6 = scmp.lt.u32.totalorder %s908_s28, %s1275_s19 }
 0x356   : > { %p910_p5 = pnand %p909_p4, %p1335_p11 }
 0x357   : > { %p915_p3 = por %p914_p1, %p913_p9 }
 0x358   : > { %p911_p7 = pneg %p910_p5 }
 0x359   : > { %p917_p12 = por %p916_p6, %p915_p3 }
 0x35b   : > { %p918_p13 = pnand %p917_p12, %p911_p7 }
 0x35d   : > { %921 = shalt.err (!%p918_p13)
}
 0x35e   : > { %s969_s4 = smov 256   ;;  %s970_s6 = smov 16  }
 0x35f   : > { %781 = dma.vmem_to_hbm [thread:$0]  (%p1335_p11), %s1277_s7, 2048, %s1275_s19, %s596_s16, %s969_s4, %s969_s4, %s970_s6  }
 0x360 PF: > { %s624_s9 = sand.u32 1, %s948_s12   ;;  %p1336_p8 = scmp.ne.s32.totalorder %s1333_s25, 0 }
 0x361   : > { %p1337_p10 = scmp.ge.s32.totalorder %s960_s15, 2  ;;  %s625_s8 = scalar_lea.sflag [#allocation4], %s624_s9 }
 0x363   : > { %p788_p0 = pnand %p1337_p10, %p1336_p8 }
 0x365   : > { %943 = dma.done.wait (!%p788_p0), %s625_s8, 2048  }
 0x366   : > { %945 = vsyncadd (!%p788_p0), %s625_s8, 4294965248  ;;  %p16_p2 = scmp.ge.s32.totalorder %s1016_s18, 4   ;;  %s1338_s12 = smov %s952_s13 }
 0x367   : > { %s1339_s13 = smov %s956_s14  ;;  %s1340_s14 = smov %s1028_s21 }
 0x368   : > { %s1341_s15 = smov %s1016_s18  ;;  %18 = sbr.rel (!%p16_p2) target bundleno = 5 (0x5), region = 77 }
 0x36f   :  { %630 = vsyncpa [#allocation3], 1 }
 0x370   :  { %632 = vsyncpa [#allocation3 + $0x1], 1 }
 0x371   :  { %633 = vsyncpa [#allocation4], 1 }
 0x372   :  { %635 = vsyncpa [#allocation4 + $0x1], 1 }

</bundles_post_ra>
